<compile_context>
chip_gen: v7x
topology: tpu7x:2x2x1
jax: 0.10.0
libtpu: 0.0.40
codegen_flags: <defaults>
</compile_context>

<pallas_src>
import jax
import jax.numpy as jnp
import numpy as np
from jax.experimental import pallas as pl
from jax.experimental.pallas import tpu as pltpu


def _round_up(a, m):
    return ((a + m - 1) // m) * m


# ---------------------------------------------------------------------------
# Kernel: two bf16 MXU matmuls (+bias, ReLU), f32 accumulation, direct O-wide store.
# ---------------------------------------------------------------------------
def _fused_mlp_kernel(x_ref, w_pre_ref, b_pre_ref, w_post_ref, b_post_ref, o_ref):
    x = x_ref[...].astype(jnp.bfloat16)                      # (tm, E)
    h = jnp.dot(x, w_pre_ref[...],
                preferred_element_type=jnp.float32)          # (tm, Hp) f32
    h = jnp.maximum(h + b_pre_ref[...], 0.0)                 # bias + ReLU in f32
    o = jnp.dot(h.astype(jnp.bfloat16), w_post_ref[...],
                preferred_element_type=jnp.float32)          # (tm, O) f32
    o_ref[...] = (o + b_post_ref[...]).astype(o_ref.dtype)


# ---------------------------------------------------------------------------
# One-time parameter preparation (folding + padding + bf16 cast), hoisted out
# of the per-call path.  Valid only because seq_len == 1 (see header comment).
# ---------------------------------------------------------------------------
def prepare_params(params, num_heads):
    E = params["in_proj_w"].shape[1]
    H = params["fc1_w"].shape[0]
    O = params["fc2_w"].shape[0]
    del num_heads  # softmax over a single key is 1 for every head

    in_w = params["in_proj_w"]                               # (3E, E)
    in_b = params["in_proj_b"]                               # (3E,)
    wv, bv = in_w[2 * E:, :], in_b[2 * E:]                   # V projection only
    wo, bo = params["out_proj_w"], params["out_proj_b"]
    w1, b1 = params["fc1_w"], params["fc1_b"]
    w2, b2 = params["fc2_w"], params["fc2_b"]

    # attn == v  =>  pre-ReLU affine fold of (V-proj, out_proj, fc1):
    #   h = x @ (Wv^T Wo^T W1^T) + ((bv Wo^T + bo) W1^T + b1)
    w_pre = wv.T @ wo.T @ w1.T                               # (E, H) f32
    b_pre = (bv @ wo.T + bo) @ w1.T + b1                     # (H,)  f32

    # Zero-pad hidden dim to a lane-dense multiple of 128 (exact: ReLU(0) = 0
    # and the padded rows of W_post are zero).
    Hp = _round_up(max(H, 1), 128)
    w_pre_p = jnp.zeros((E, Hp), jnp.float32).at[:, :H].set(w_pre)
    b_pre_p = jnp.zeros((1, Hp), jnp.float32).at[0, :H].set(b_pre)
    w_post_p = jnp.zeros((Hp, O), jnp.float32).at[:H, :].set(w2.T)
    b_post_p = jnp.asarray(b2, jnp.float32)[None, :]         # (1, O)

    return {
        "w_pre": w_pre_p.astype(jnp.bfloat16),               # (E, Hp)  bf16
        "b_pre": b_pre_p,                                    # (1, Hp)  f32
        "w_post": w_post_p.astype(jnp.bfloat16),             # (Hp, O)  bf16
        "b_post": b_post_p,                                  # (1, O)   f32
    }


def _vmem_limit_bytes(tm, E, Hp, O, x_itemsize):
    tile_bytes = (2 * tm * E * x_itemsize                    # x, double-buffered
                  + 2 * tm * O * 4                           # out, double-buffered
                  + tm * Hp * 4)                             # f32 intermediate h
    weight_bytes = (E * Hp + Hp * O) * 2 + (Hp + O) * 4
    need = 2 * (tile_bytes + weight_bytes) + (1 << 20)       # 2x headroom + 1 MiB
    # Clamp: never below 16 MiB (covers small tiles), never above 56 MiB
    # (keeps headroom under v7x's 64 MiB physical VMEM per TensorCore).
    return int(min(max(need, 16 * 1024 * 1024), 56 * 1024 * 1024))


# ---------------------------------------------------------------------------
# Forward wrapper: batch-tiled pallas_call, weights resident across the grid.
# Pass x as bf16 if available to halve the HBM read; f32 also accepted.
# ---------------------------------------------------------------------------
def self_attention_dnn_forward(x, prepared, tm_max=4096):
    w_pre, b_pre = prepared["w_pre"], prepared["b_pre"]
    w_post, b_post = prepared["w_post"], prepared["b_post"]
    N, E = x.shape
    Hp = w_pre.shape[1]
    O = w_post.shape[1]

    # Batch tile: multiple of 8 rows, at least 2 grid steps for large N
    # (keeps both v7x TensorCores busy; no-op on single-core v5e/v6e),
    # capped at tm_max to bound the double-buffered VMEM working set.
    tm = min(tm_max, _round_up(pl.cdiv(N, 2), 8))
    grid = (pl.cdiv(N, tm),)

    out = pl.pallas_call(
        _fused_mlp_kernel,
        out_shape=jax.ShapeDtypeStruct((N, O), jnp.float32),
        grid=grid,
        in_specs=[
            pl.BlockSpec((tm, E), lambda i: (i, 0)),          # activations: streamed
            pl.BlockSpec(w_pre.shape, lambda i: (0, 0)),      # weights: resident
            pl.BlockSpec(b_pre.shape, lambda i: (0, 0)),
            pl.BlockSpec(w_post.shape, lambda i: (0, 0)),
            pl.BlockSpec(b_post.shape, lambda i: (0, 0)),
        ],
        out_specs=pl.BlockSpec((tm, O), lambda i: (i, 0)),    # exact (N, O) output
        compiler_params=pltpu.CompilerParams(
            dimension_semantics=("parallel",),
            vmem_limit_bytes=_vmem_limit_bytes(tm, E, Hp, O, x.dtype.itemsize)),
    )(x, w_pre, b_pre, w_post, b_post)
    return out


# ---------------------------------------------------------------------------
# Pure-JAX reference mirroring nn.MultiheadAttention with seq_len == 1.
# ---------------------------------------------------------------------------
def reference_forward(x, params, num_heads):
    N, E = x.shape
    d = E // num_heads
    in_w, in_b = params["in_proj_w"], params["in_proj_b"]
    q = x @ in_w[:E].T + in_b[:E]
    k = x @ in_w[E:2 * E].T + in_b[E:2 * E]
    v = x @ in_w[2 * E:].T + in_b[2 * E:]
    qh = q.reshape(N, num_heads, d)
    kh = k.reshape(N, num_heads, d)
    vh = v.reshape(N, num_heads, d)
    s = jnp.sum(qh * kh, axis=-1) / jnp.sqrt(d)            # (N, nh), single key
    p = jax.nn.softmax(s[..., None], axis=-1)[..., 0]      # == 1
    attn = (p[..., None] * vh).reshape(N, E)
    attn_out = attn @ params["out_proj_w"].T + params["out_proj_b"]
    h1 = jax.nn.relu(attn_out @ params["fc1_w"].T + params["fc1_b"])
    return h1 @ params["fc2_w"].T + params["fc2_b"]


if __name__ == "__main__":
    # Small shapes consistent with the module: embed = 32, num_heads = 4,
    # hidden = 32, output = 8.
    E, NH, H, O = 32, 4, 32, 8

    key = jax.random.PRNGKey(0)
    keys = jax.random.split(key, 9)
    params = {
        "in_proj_w":  0.1 * jax.random.normal(keys[0], (3 * E, E), jnp.float32),
        "in_proj_b":  0.1 * jax.random.normal(keys[1], (3 * E,), jnp.float32),
        "out_proj_w": 0.1 * jax.random.normal(keys[2], (E, E), jnp.float32),
        "out_proj_b": 0.1 * jax.random.normal(keys[3], (E,), jnp.float32),
        "fc1_w":      0.1 * jax.random.normal(keys[4], (H, E), jnp.float32),
        "fc1_b":      0.1 * jax.random.normal(keys[5], (H,), jnp.float32),
        "fc2_w":      0.1 * jax.random.normal(keys[6], (O, H), jnp.float32),
        "fc2_b":      0.1 * jax.random.normal(keys[7], (O,), jnp.float32),
    }

    # One-time weight preparation (folding + padding + bf16 cast).
    prepared = jax.tree_util.tree_map(jax.block_until_ready,
                                      prepare_params(params, NH))

    # Exercise single-step, multi-step, and non-divisible (tail) grids.
    for N in (8, 512, 300):
        x = jax.random.normal(jax.random.fold_in(keys[8], N), (N, E), jnp.float32)
        out = jax.block_until_ready(self_attention_dnn_forward(x, prepared))
        ref = reference_forward(x, params, NH)
        np.testing.assert_allclose(np.asarray(out), np.asarray(ref),
                                   rtol=2e-2, atol=2e-2)

    print("KERNEL_OK")
</pallas_src>

<mosaic_0001>
module attributes {stable_mosaic.version = 11 : i64} {
  func.func @_fused_mlp_kernel(%arg0: i32, %arg1: memref<8x32xf32, #tpu.memory_space<vmem>>, %arg2: memref<32x128xbf16, #tpu.memory_space<vmem>>, %arg3: memref<1x128xf32, #tpu.memory_space<vmem>>, %arg4: memref<128x8xbf16, #tpu.memory_space<vmem>>, %arg5: memref<1x8xf32, #tpu.memory_space<vmem>>, %arg6: memref<8x8xf32, #tpu.memory_space<vmem>>) attributes {dimension_semantics = [#tpu.dimension_semantics<parallel>], iteration_bounds = array<i64: 1>, scalar_prefetch = 0 : i64, scratch_operands = 0 : i64, tpu.core_type = #tpu.core_type<tc>, window_params = [{transform_indices = @transform_0, window_bounds = array<i64: 8, 32>}, {pipeline_mode = #tpu.pipeline_mode<synchronous>, transform_indices = @transform_1, window_bounds = array<i64: 32, 128>}, {pipeline_mode = #tpu.pipeline_mode<synchronous>, transform_indices = @transform_2, window_bounds = array<i64: 1, 128>}, {pipeline_mode = #tpu.pipeline_mode<synchronous>, transform_indices = @transform_3, window_bounds = array<i64: 128, 8>}, {pipeline_mode = #tpu.pipeline_mode<synchronous>, transform_indices = @transform_4, window_bounds = array<i64: 1, 8>}, {transform_indices = @transform_5, window_bounds = array<i64: 8, 8>}]} {
    %c0 = arith.constant 0 : index
    %c0_0 = arith.constant 0 : index
    %0 = vector.load %arg1[%c0, %c0_0] : memref<8x32xf32, #tpu.memory_space<vmem>>, vector<8x32xf32>
    %1 = arith.truncf %0 : vector<8x32xf32> to vector<8x32xbf16>
    %c0_1 = arith.constant 0 : index
    %c0_2 = arith.constant 0 : index
    %2 = vector.load %arg2[%c0_1, %c0_2] : memref<32x128xbf16, #tpu.memory_space<vmem>>, vector<32x128xbf16>
    %cst = arith.constant dense<0.000000e+00> : vector<8x128xf32>
    %3 = tpu.matmul %1, %2, %cst {dimension_numbers = #tpu.dot_dimension_numbers<[1], [0], [0], [1], [0, 0, 1, 1], [], []>} : vector<8x32xbf16>, vector<32x128xbf16>, vector<8x128xf32> -> vector<8x128xf32>
    %c0_3 = arith.constant 0 : index
    %c0_4 = arith.constant 0 : index
    %4 = vector.load %arg3[%c0_3, %c0_4] : memref<1x128xf32, #tpu.memory_space<vmem>>, vector<1x128xf32>
    %5 = vector.broadcast %4 : vector<1x128xf32> to vector<8x128xf32>
    %6 = arith.addf %3, %5 : vector<8x128xf32>
    %cst_5 = arith.constant 0.000000e+00 : f32
    %7 = vector.broadcast %cst_5 : f32 to vector<8x128xf32>
    %8 = arith.maximumf %6, %7 : vector<8x128xf32>
    %9 = arith.truncf %8 : vector<8x128xf32> to vector<8x128xbf16>
    %c0_6 = arith.constant 0 : index
    %c0_7 = arith.constant 0 : index
    %10 = vector.load %arg4[%c0_6, %c0_7] : memref<128x8xbf16, #tpu.memory_space<vmem>>, vector<128x8xbf16>
    %cst_8 = arith.constant dense<0.000000e+00> : vector<8x8xf32>
    %11 = tpu.matmul %9, %10, %cst_8 {dimension_numbers = #tpu.dot_dimension_numbers<[1], [0], [0], [1], [0, 0, 1, 1], [], []>} : vector<8x128xbf16>, vector<128x8xbf16>, vector<8x8xf32> -> vector<8x8xf32>
    %c0_9 = arith.constant 0 : index
    %c0_10 = arith.constant 0 : index
    %12 = vector.load %arg5[%c0_9, %c0_10] : memref<1x8xf32, #tpu.memory_space<vmem>>, vector<1x8xf32>
    %13 = vector.broadcast %12 : vector<1x8xf32> to vector<8x8xf32>
    %14 = arith.addf %11, %13 : vector<8x8xf32>
    %c0_11 = arith.constant 0 : index
    %c0_12 = arith.constant 0 : index
    %15 = vector.load %arg6[%c0_11, %c0_12] : memref<8x8xf32, #tpu.memory_space<vmem>>, vector<8x8xf32>
    tpu.vector_store %arg6[%c0_11, %c0_12], %14 {strides = array<i32>} : memref<8x8xf32, #tpu.memory_space<vmem>>, vector<8x8xf32>,
    return
  }
  func.func @transform_0(%arg0: i32) -> (i32, i32) {
    %c0_i32 = arith.constant 0 : i32
    %c0_i32_0 = arith.constant 0 : i32
    return %arg0, %c0_i32 : i32, i32
  }
  func.func @transform_1(%arg0: i32) -> (i32, i32) {
    %c0_i32 = arith.constant 0 : i32
    %c0_i32_0 = arith.constant 0 : i32
    %c0_i32_1 = arith.constant 0 : i32
    return %c0_i32, %c0_i32_0 : i32, i32
  }
  func.func @transform_2(%arg0: i32) -> (i32, i32) {
    %c0_i32 = arith.constant 0 : i32
    %c0_i32_0 = arith.constant 0 : i32
    %c0_i32_1 = arith.constant 0 : i32
    return %c0_i32, %c0_i32_0 : i32, i32
  }
  func.func @transform_3(%arg0: i32) -> (i32, i32) {
    %c0_i32 = arith.constant 0 : i32
    %c0_i32_0 = arith.constant 0 : i32
    %c0_i32_1 = arith.constant 0 : i32
    return %c0_i32, %c0_i32_0 : i32, i32
  }
  func.func @transform_4(%arg0: i32) -> (i32, i32) {
    %c0_i32 = arith.constant 0 : i32
    %c0_i32_0 = arith.constant 0 : i32
    %c0_i32_1 = arith.constant 0 : i32
    return %c0_i32, %c0_i32_0 : i32, i32
  }
  func.func @transform_5(%arg0: i32) -> (i32, i32) {
    %c0_i32 = arith.constant 0 : i32
    %c0_i32_0 = arith.constant 0 : i32
    return %arg0, %c0_i32 : i32, i32
  }
}

</mosaic_0001>

<bundles_post_ra>
// kernel: tpu_custom_call.1
= control target key start
LH: loop header
LB: loop body
LE: loop exit
PB: predicated region body
PF: predicated region fallthrough
CT: control target
= control target key end

     0   :  { %v310_v1 = vmov 0.0   ;;  %vm311_vm0 = vmmov 0   ;;  %vm47_vm1 = vcmask 261120   ;;  %s394_s0 = inlined_call_operand.vmem [shape: f32[8,32], index: 0, kind: input, shape index: {}]   ;;  %s395_s1 = inlined_call_operand.vmem [shape: bf16[32,128], index: 1, kind: input, shape index: {}]   ;;  %s396_s2 = inlined_call_operand.vmem [shape: f32[1,128], index: 2, kind: input, shape index: {}]   ;;  %s397_s3 = inlined_call_operand.vmem [shape: bf16[128,8], index: 3, kind: input, shape index: {}]   ;;  %s398_s4 = inlined_call_operand.vmem [shape: f32[1,8], index: 4, kind: input, shape index: {}]   ;;  %s399_s5 = inlined_call_operand.hbm [shape: f32[8,8], index: 5, kind: output, shape index: {}]  }
   0x1   :  { %v276_v0 = vld [vmem:[%s395_s1] sm:$0xff]   ;;  %245 = vmatprep.subr.bf16.mxu0 %v310_v1  ;;  %v277_v2 = vld [vmem:[%s395_s1 + $0x8] sm:$0xff]   ;;  %253 = vmatprep.subr.bf16.mxu1 %v310_v1  ;;  %v280_v7 = vld [vmem:[%s397_s3 + $0x10] sm:$0xff]  }
   0x2   :  { %246 = vmatpush3.bf16.msra.mxu0 %v276_v0  ;;  %249 = vmatprep.mubr.msk.bf16.mxu0 %vm311_vm0, %v310_v1  ;;  %v22_v3 = vld [vmem:[%s394_s0] sm:$0xff]  ;;  %v279_v6 = vld [vmem:[%s397_s3 + $0x8] sm:$0xff]  }
   0x3   :  { %247 = vmatprep.subr.bf16.mxu0 %v310_v1  ;;  %v278_v4 = vld [vmem:[%s397_s3] sm:$0xff]   ;;  %269 = vmatprep.mubr.msk.bf16.mxu1 %vm311_vm0, %v310_v1  ;;  %v23_v5 = vpack.c.bf16 %v22_v3, %v22_v3 }
   0x4   :  { %254 = vmatpush3.bf16.msra.mxu1 %v278_v4 }
   0x5   :  { %255 = vmatprep.subr.bf16.mxu1 %v310_v1 }
   0x6   :  { %248 = vmatpush3.bf16.msra.mxu0 %v277_v2 }
   0x8   :  { %256 = vmatpush3.bf16.msra.mxu1 %v279_v6 }
   0x9   :  { %250 = vmatmul.mubr.msk.bf16.vlgmr.msra.gmra.mrb[0].mxu0 %vm47_vm1, %v23_v5  ;;  %257 = vmatprep.subr.bf16.mxu1 %v310_v1 }
   0xa   :  { %10 = vsyncpa [#allocation3], 0  ;;  %v281_v8 = vld [vmem:[%s397_s3 + $0x18] sm:$0xff]   ;;  %v282_v9 = vld [vmem:[%s397_s3 + $0x20] sm:$0xff]   ;;  %s312_s17 = smov [#allocation2]   ;;  %vm204_vm2 = vcmask 64512  }
   0xb   :  { %v283_v10 = vld [vmem:[%s397_s3 + $0x28] sm:$0xff]   ;;  %v284_v11 = vld [vmem:[%s397_s3 + $0x30] sm:$0xff]   ;;  %v285_v12 = vld [vmem:[%s397_s3 + $0x38] sm:$0xff]   ;;  %s212_s18 = sshll.u32 %s312_s17, 4  ;;  %s213_s18 = int_to_ptr.vmem [resolvable:$true] %s212_s18 }
   0xc   :  { %258 = vmatpush3.bf16.msra.mxu1 %v280_v7  ;;  %v220_v13 = vld [vmem:[%s396_s2] ss:$0 sm:$0xff]  ;;  %s286_s2 = scalar_lea.vmem %s213_s18, 128  ;;  %p291_p1 = scmp.lt.s32.totalorder %s213_s18, %s213_s18 }
   0xd   :  { %259 = vmatprep.subr.bf16.mxu1 %v310_v1  ;;  %v224_v21 = vld [vmem:[%s398_s4] ss:$0 sm:$0xff]  ;;  %p287_p0 = scmp.ne.s32.totalorder %s213_s18, %s286_s2  ;;  %p292_p2 = scmp.lt.s32.totalorder %s286_s2, %s286_s2 }
   0xf   :  { %p293_p3 = por %p292_p2, %p291_p1 }
  0x10   :  { %260 = vmatpush3.bf16.msra.mxu1 %v281_v8 }
  0x11   :  { %261 = vmatprep.subr.bf16.mxu1 %v310_v1  ;;  %p294_p4 = pnand %p293_p3, %p287_p0 }
  0x14   :  { %262 = vmatpush3.bf16.msra.mxu1 %v282_v9 }
  0x15   :  { %263 = vmatprep.subr.bf16.mxu1 %v310_v1 }
  0x18   :  { %264 = vmatpush3.bf16.msra.mxu1 %v283_v10 }
  0x19   :  { %265 = vmatprep.subr.bf16.mxu1 %v310_v1 }
  0x1c   :  { %266 = vmatpush3.bf16.msra.mxu1 %v284_v11 }
  0x1d   :  { %267 = vmatprep.subr.bf16.mxu1 %v310_v1 }
  0x20   :  { %268 = vmatpush3.bf16.msra.mxu1 %v285_v12 }
  0xdc   :  { %v85_v14 = vpop.f32.mrb[0].mxu0 }
  0xdd   :  { %v86_v15 = vadd.f32 %v220_v13, %v85_v14  ;;  %v251_v16 = vpop.f32.mrb[1].mxu0 }
  0xde   :  { %v88_v17 = vpop.f32.mrb[2].mxu0 }
  0xdf   :  { %v91_v18 = vmax.f32 %v86_v15, 0.0  ;;  %v252_v19 = vpop.f32.mrb[3].mxu0 }
  0xe1   :  { %v92_v20 = vpack.c.bf16 %v91_v18, %v91_v18 }
  0xe3   :  { %270 = vmatmul.mubr.bf16.vlgmr.msra.gmra.mrb[0].mxu1 %v92_v20 }
 0x1b6   :  { %v198_v22 = vpop.f32.mrb[0].mxu1 }
 0x1b7   :  { %v199_v23 = vadd.f32 %v224_v21, %v198_v22  ;;  %v271_v24 = vpop.f32.mrb[1].mxu1 }
 0x1b8   :  { %v201_v25 = vpop.f32.mrb[2].mxu1 }
 0x1b9   :  { %v272_v26 = vpop.f32.mrb[3].mxu1  ;;  %205 = vst.msk [vmem:[#allocation2] sm:$0xff] %vm204_vm2, %v199_v23 }
 0x1ba   :  { %297 = shalt.err (!%p294_p4)
}
 0x1bb   :  { %s298_s4 = scalar_lea.hbm %s399_s5, 128 }
 0x1bc   :  { %p299_p5 = scmp.ne.s32.totalorder %s399_s5, %s298_s4  ;;  %p302_p6 = scmp.lt.u32.totalorder %s298_s4, %s399_s5 }
 0x1be   :  { %p304_p7 = pnand %p302_p6, %p299_p5 }
 0x1c0   :  { %307 = shalt.err (!%p304_p7)
}
 0x1c1   :  { %215 = dma.vmem_to_hbm [thread:$0]  %s213_s18, 128, %s399_s5, [#allocation3]  }
 0x1c2   :  { %308 = dma.done.wait [#allocation3], 128  }
 0x1c3   :  { %309 = vsyncadd [#allocation3], 4294967168 }
 0x1c4   :  { %219 = vsyncpa [#allocation3], 1 }

</bundles_post_ra>
